<compile_context>
chip_gen: v5e
topology: v5e:2x2
jax: 0.10.0
libtpu: 0.0.40
codegen_flags: <defaults>
</compile_context>

<pallas_src>
import jax
import jax.numpy as jnp
from jax import lax
from jax.experimental import pallas as pl
from jax.experimental.pallas import tpu as pltpu


def _round_up(x, m):
    return ((x + m - 1) // m) * m


def _attention_kernel(put_ref, wft_ref, bt_ref, o_ref):
    # Transposed layout: batch lives on the 128-lane axis everywhere.
    put = put_ref[...].astype(jnp.float32)    # (d, TB)   query tile (transposed)
    wft = wft_ref[...].astype(jnp.float32)    # (n_k, d)  fused weight: W @ (mp / doc_norm)
    bt = bt_ref[...].astype(jnp.float32)      # (n_k, 1)  bias column

    d = put.shape[0]

    # Single MXU push per tile: yT = WfT @ puT  -> (n_k, TB).
    yt = lax.dot_general(wft, put, (((1,), (0,)), ((), ())),
                         preferred_element_type=jnp.float32)

    # inv_q[m] = 1 / sqrt(sum_k pu[m,k]^2 + d*1e-5): one EUP rsqrt per column.
    inv_q = lax.rsqrt(jnp.sum(put * put, axis=0, keepdims=True)
                      + jnp.float32(d * 1e-5))                      # (1, TB)

    y = yt * inv_q + bt                                             # (n_k, TB)

    # Softmax over n_k (axis 0, 8 sublanes).
    y = y - jnp.max(y, axis=0, keepdims=True)
    e = jnp.exp(y)
    # approx=False keeps the output within the 1e-5 reference tolerance.
    inv_l = pl.reciprocal(jnp.sum(e, axis=0, keepdims=True), approx=False)
    o_ref[...] = (e * inv_l).astype(o_ref.dtype)


def attention_forward_batched(pu_batch, mp, W, b, *, tile_b=2048):
    """Batched attention: pu_batch (B, d) queries against shared mp (n_k, d).

    Returns (B, n_k): row i is the PyTorch module output for query pu_batch[i].
    """
    B, d = pu_batch.shape
    n_k = mp.shape[0]
    f32 = jnp.float32

    # --- Wrapper-side algebraic fusion (query-independent, computed once) ---
    # cos = (pu @ mp.T) * inv_q * inv_doc ; y = cos @ W.T + b
    #   =>  y = inv_q * (pu @ WfT.T) + b   with  WfT = W @ (mp * inv_doc[:, None]).
    mp32 = mp.astype(f32)
    W32 = W.astype(f32)
    inv_doc = lax.rsqrt(jnp.sum(mp32 * mp32, axis=1) + f32(d * 1e-5))  # (n_k,)
    wft = W32 @ (mp32 * inv_doc[:, None])                              # (n_k, d)
    bt = b.astype(f32).reshape(n_k, 1)

    # --- Tile selection: big tiles to amortize per-step overhead, but keep at
    # least 2 grid steps when B allows it (v7x has 2 TensorCores). ---
    if B <= 128:
        tile_b = 128
    else:
        tile_b = max(128, min(tile_b, _round_up((B + 1) // 2, 128)))
    b_pad = _round_up(B, tile_b)

    # Transposed queries: (d, b_pad), batch on the lane axis. Zero padding rows
    # are numerically safe (the d*1e-5 keeps every norm strictly positive).
    put = pu_batch.T
    if b_pad != B:
        put = jnp.pad(put, ((0, 0), (0, b_pad - B)))

    grid = (b_pad // tile_b,)
    out_t = pl.pallas_call(
        _attention_kernel,
        out_shape=jax.ShapeDtypeStruct((n_k, b_pad), jnp.float32),
        grid_spec=pltpu.PrefetchScalarGridSpec(
            num_scalar_prefetch=0,
            grid=grid,
            in_specs=[
                pl.BlockSpec((d, tile_b), lambda i: (0, i)),   # puT: marches over batch
                pl.BlockSpec((n_k, d), lambda i: (0, 0)),      # fused weight: resident
                pl.BlockSpec((n_k, 1), lambda i: (0, 0)),      # bias: resident
            ],
            out_specs=pl.BlockSpec((n_k, tile_b), lambda i: (0, i)),
        ),
        compiler_params=pltpu.CompilerParams(
            dimension_semantics=("parallel",)),
    )(put, wft, bt)

    # Lane-dense (n_k, B) result; transpose back to the module's (B, n_k) view.
    return out_t[:, :B].T


def attention_forward(pu, mp, W, b):
    """Exact PyTorch module semantics: pu (1, d), mp (n_k, d) -> (n_k,).

    Per review: a single 8x32 query is pure kernel-launch overhead, so this path
    is plain JAX (XLA fuses it); the Pallas kernel is the batched path above.
    """
    return attention_reference(pu, mp, W, b)


def attention_reference(pu, mp, W, b):
    """Pure-JAX reference mirroring the PyTorch code exactly (single query)."""
    expanded_pu = jnp.broadcast_to(pu, mp.shape)            # repeat(1, n_k).view(n_k, -1)
    q_norm = jnp.sqrt(jnp.sum(expanded_pu ** 2 + 1e-5, axis=1))
    d_norm = jnp.sqrt(jnp.sum(mp ** 2 + 1e-5, axis=1))
    prod = jnp.sum(expanded_pu * mp, axis=1)
    cos = prod / (q_norm * d_norm)                          # (n_k,)
    y = W @ cos + b                                         # Linear on 1-D input
    return jax.nn.softmax(y)


if __name__ == "__main__":
    n_k = 8      # number of memories == Linear in/out features
    d = 32       # embedding dim
    B = 256      # batched-query demo size (2 parallel grid steps of 128)

    key = jax.random.PRNGKey(0)
    k_pu, k_mp, k_w, k_b, k_pb = jax.random.split(key, 5)

    pu = jax.random.normal(k_pu, (1, d), dtype=jnp.float32)
    mp = jax.random.normal(k_mp, (n_k, d), dtype=jnp.float32)
    # Deterministic synthetic Linear(n_k, n_k) params (PyTorch-style uniform fan-in init).
    bound = 1.0 / (n_k ** 0.5)
    W = jax.random.uniform(k_w, (n_k, n_k), minval=-bound, maxval=bound, dtype=jnp.float32)
    b = jax.random.uniform(k_b, (n_k,), minval=-bound, maxval=bound, dtype=jnp.float32)

    # 1) Batched Pallas path: (B, d) queries in one call against the reference.
    pu_batch = jax.random.normal(k_pb, (B, d), dtype=jnp.float32)
    out_b = attention_forward_batched(pu_batch, mp, W, b)
    jax.block_until_ready(out_b)
    ref_b = jax.vmap(lambda q: attention_reference(q[None, :], mp, W, b))(pu_batch)
    assert out_b.shape == (B, n_k)
    assert jnp.allclose(out_b, ref_b, atol=1e-5, rtol=1e-5)

    # 2) Exact module shape: the Pallas kernel output for a single query matches
    #    the PyTorch-equivalent forward (pu (1, d) -> (n_k,)).
    out_single_pallas = attention_forward_batched(pu, mp, W, b)[0]
    jax.block_until_ready(out_single_pallas)
    out_single_ref = attention_forward(pu, mp, W, b)
    assert out_single_pallas.shape == (n_k,)
    assert jnp.allclose(out_single_pallas, out_single_ref, atol=1e-5, rtol=1e-5)

    print("KERNEL_OK")
</pallas_src>

<mosaic_0001>
module attributes {stable_mosaic.version = 11 : i64} {
  func.func @_attention_kernel(%arg0: i32, %arg1: memref<32x128xf32, #tpu.memory_space<vmem>>, %arg2: memref<8x32xf32, #tpu.memory_space<vmem>>, %arg3: memref<8x1xf32, #tpu.memory_space<vmem>>, %arg4: memref<8x128xf32, #tpu.memory_space<vmem>>) attributes {dimension_semantics = [#tpu.dimension_semantics<parallel>], iteration_bounds = array<i64: 2>, scalar_prefetch = 0 : i64, scratch_operands = 0 : i64, tpu.core_type = #tpu.core_type<tc>, window_params = [{transform_indices = @transform_0, window_bounds = array<i64: 32, 128>}, {pipeline_mode = #tpu.pipeline_mode<synchronous>, transform_indices = @transform_1, window_bounds = array<i64: 8, 32>}, {pipeline_mode = #tpu.pipeline_mode<synchronous>, transform_indices = @transform_2, window_bounds = array<i64: 8, 1>}, {transform_indices = @transform_3, window_bounds = array<i64: 8, 128>}]} {
    %c0 = arith.constant 0 : index
    %c0_0 = arith.constant 0 : index
    %0 = vector.load %arg1[%c0, %c0_0] : memref<32x128xf32, #tpu.memory_space<vmem>>, vector<32x128xf32>
    %c0_1 = arith.constant 0 : index
    %c0_2 = arith.constant 0 : index
    %1 = vector.load %arg2[%c0_1, %c0_2] : memref<8x32xf32, #tpu.memory_space<vmem>>, vector<8x32xf32>
    %c0_3 = arith.constant 0 : index
    %c0_4 = arith.constant 0 : index
    %2 = vector.load %arg3[%c0_3, %c0_4] : memref<8x1xf32, #tpu.memory_space<vmem>>, vector<8x1xf32>
    %cst = arith.constant dense<0.000000e+00> : vector<8x128xf32>
    %3 = tpu.matmul %1, %0, %cst {dimension_numbers = #tpu.dot_dimension_numbers<[1], [0], [0], [1], [0, 0, 1, 1], [], []>} : vector<8x32xf32>, vector<32x128xf32>, vector<8x128xf32> -> vector<8x128xf32>
    %4 = arith.mulf %0, %0 : vector<32x128xf32>
    %cst_5 = arith.constant dense<0.000000e+00> : vector<128xf32>
    %5 = vector.multi_reduction <add>, %4, %cst_5 [0] : vector<32x128xf32> to vector<128xf32>
    %6 = vector.shape_cast %5 : vector<128xf32> to vector<1x128xf32>
    %cst_6 = arith.constant 3.200000e-04 : f32
    %7 = vector.broadcast %cst_6 : f32 to vector<1x128xf32>
    %8 = arith.addf %6, %7 : vector<1x128xf32>
    %9 = math.rsqrt %8 : vector<1x128xf32>
    %10 = vector.broadcast %9 : vector<1x128xf32> to vector<8x128xf32>
    %11 = arith.mulf %3, %10 : vector<8x128xf32>
    %12 = vector.broadcast %2 : vector<8x1xf32> to vector<8x128xf32>
    %13 = arith.addf %11, %12 : vector<8x128xf32>
    %cst_7 = arith.constant dense<0xFF800000> : vector<128xf32>
    %14 = vector.multi_reduction <maximumf>, %13, %cst_7 [0] : vector<8x128xf32> to vector<128xf32>
    %15 = vector.shape_cast %14 : vector<128xf32> to vector<1x128xf32>
    %16 = vector.broadcast %15 : vector<1x128xf32> to vector<8x128xf32>
    %17 = arith.subf %13, %16 : vector<8x128xf32>
    %18 = math.exp %17 : vector<8x128xf32>
    %cst_8 = arith.constant dense<0.000000e+00> : vector<128xf32>
    %19 = vector.multi_reduction <add>, %18, %cst_8 [0] : vector<8x128xf32> to vector<128xf32>
    %20 = vector.shape_cast %19 : vector<128xf32> to vector<1x128xf32>
    %21 = tpu.reciprocal %20 : vector<1x128xf32> -> vector<1x128xf32>
    %22 = vector.broadcast %21 : vector<1x128xf32> to vector<8x128xf32>
    %23 = arith.mulf %18, %22 : vector<8x128xf32>
    %c0_9 = arith.constant 0 : index
    %c0_10 = arith.constant 0 : index
    %24 = vector.load %arg4[%c0_9, %c0_10] : memref<8x128xf32, #tpu.memory_space<vmem>>, vector<8x128xf32>
    tpu.vector_store %arg4[%c0_9, %c0_10], %23 {strides = array<i32>} : memref<8x128xf32, #tpu.memory_space<vmem>>, vector<8x128xf32>,
    return
  }
  func.func @transform_0(%arg0: i32) -> (i32, i32) {
    %c0_i32 = arith.constant 0 : i32
    %c0_i32_0 = arith.constant 0 : i32
    return %c0_i32, %arg0 : i32, i32
  }
  func.func @transform_1(%arg0: i32) -> (i32, i32) {
    %c0_i32 = arith.constant 0 : i32
    %c0_i32_0 = arith.constant 0 : i32
    %c0_i32_1 = arith.constant 0 : i32
    return %c0_i32, %c0_i32_0 : i32, i32
  }
  func.func @transform_2(%arg0: i32) -> (i32, i32) {
    %c0_i32 = arith.constant 0 : i32
    %c0_i32_0 = arith.constant 0 : i32
    %c0_i32_1 = arith.constant 0 : i32
    return %c0_i32, %c0_i32_0 : i32, i32
  }
  func.func @transform_3(%arg0: i32) -> (i32, i32) {
    %c0_i32 = arith.constant 0 : i32
    %c0_i32_0 = arith.constant 0 : i32
    return %c0_i32, %arg0 : i32, i32
  }
}

</mosaic_0001>

<bundles_post_ra>
// kernel: tpu_custom_call.1
= control target key start
LH: loop header
LB: loop body
LE: loop exit
PB: predicated region body
PF: predicated region fallthrough
CT: control target
= control target key end

     0   :  { %8 = vsyncpa [#allocation3], 0  ;;  %s692_s0 = inlined_call_operand.hbm [shape: f32[32,256], index: 0, kind: input, shape index: {}]   ;;  %s693_s1 = inlined_call_operand.vmem [shape: f32[8,32], index: 1, kind: input, shape index: {}]   ;;  %s694_s2 = inlined_call_operand.vmem [shape: f32[8,1], index: 2, kind: input, shape index: {}]   ;;  %s695_s3 = inlined_call_operand.hbm [shape: f32[8,256], index: 3, kind: output, shape index: {}]  }
   0x1   :  { %10 = vsyncpa [#allocation3 + $0x1], 0 }
   0x2   :  { %11 = vsyncpa [#allocation4], 0 }
   0x3   :  { %13 = vsyncpa [#allocation4 + $0x1], 0  ;;  %s560_s12 = smov 0   ;;  %s562_s13 = smov 0  }
   0x4   :  { %s564_s14 = smov 0   ;;  %s566_s15 = smov 0  }
   0x5 LB: > { %s581_s16 = sadd.s32 4294967295, %s534_s15   ;;  %s368_s17 = sadd.s32 4294967294, %s534_s15   ;;  %s534_s15 = sphi %s566_s15, %s704_s15   ;;  %s530_s14 = sphi %s564_s14, %s703_s14   ;;  %s526_s13 = sphi %s562_s13, %s702_s13   ;;  %s522_s12 = sphi %s560_s12, %s701_s12  }
   0x6   : > { %s585_s18 = sadd.s32 1, %s534_s15   ;;  %s26_s19 = sadd.s32 1, %s530_s14 }
   0x7   : > { %s23_s20 = ssub.s32 %s534_s15, %s585_s18  ;;  %p33_p0 = scmp.ne.s32.totalorder %s530_s14, %s526_s13 }
   0x8   : > { %p24_p1 = scmp.eq.s32.totalorder %s23_s20, 0  ;;  %p34_p2 = scmp.eq.s32.totalorder %s534_s15, 0 }
   0x9   : > { %p39_p3 = scmp.ne.s32.totalorder %s526_s13, %s522_s12  ;;  %p40_p4 = scmp.eq.s32.totalorder %s581_s16, 0 }
   0xa   : > { %s597_s21 = scalar_select %p24_p1, %s530_s14, %s26_s19  }
   0xb   : > { %p599_p5 = por %p34_p2, %p33_p0  ;;  %p603_p6 = por %p40_p4, %p39_p3 }
   0xc   : > { %p105_p7 = scmp.eq.s32.totalorder %s581_s16, 1  ;;  %p111_p8 = scmp.eq.s32.totalorder %s368_s17, 1 }
   0xd   : > { %p370_p9 = scmp.ge.s32.totalorder %s534_s15, 2  ;;  %p393_p10 = scmp.lt.s32.totalorder %s534_s15, 2 }
   0xe   : > { %p610_p11 = por %p105_p7, %p33_p0  ;;  %p614_p12 = por %p111_p8, %p39_p3 }
   0xf   : > { %s137_s26 = sand.u32 1, %s530_s14   ;;  %s372_s27 = sshll.u32 %s534_s15, 3 }
  0x10   : > { %s371_s28 = sshll.u32 %s137_s26, 5  ;;  %s145_s4 = scalar_lea.hbm %s692_s0, %s372_s27 }
  0x11   : > { %s146_s5 = sshll.u32 %s145_s4, 4  ;;  %s141_s6 = scalar_lea.vmem [#allocation2], %s371_s28  ;;  %s147_s5 = int_to_ptr.hbm [resolvable:$true] %s146_s5 }
  0x12   : > { %s148_s7 = sshll.u32 %s141_s6, 4  ;;  %p625_p13 = pnand %p393_p10, %p599_p5  ;;  %s149_s7 = int_to_ptr.vmem [resolvable:$true] %s148_s7 }
  0x13   : > { %p373_p0 = scmp.ge.s32.totalorder %s534_s15, 1  ;;  %s138_s9 = scalar_lea.sflag [#allocation3], %s137_s26 }
  0x14   : > { %s438_s10 = sshra.s32 %s147_s5, 4  ;;  %p442_p2 = pneg %p625_p13  ;;  %s439_s10 = int_to_ptr.hbm [resolvable:$true] %s438_s10 }
  0x15   : > { %s440_s11 = scalar_lea.hbm %s439_s10, 32  ;;  %s445_s20 = scalar_lea.hbm %s692_s0, 64 }
  0x16   : > { %p441_p1 = scmp.ne.s32.totalorder %s439_s10, %s440_s11  ;;  %p446_p5 = scmp.lt.s32.totalorder %s439_s10, %s692_s0 }
  0x17   : > { %p447_p7 = scmp.lt.s32.totalorder %s445_s20, %s440_s11 }
  0x18   : > { %p443_p3 = pnand %p442_p2, %p441_p1 }
  0x19   : > { %p448_p8 = por %p447_p7, %p446_p5 }
  0x1a   : > { %p444_p4 = pneg %p443_p3 }
  0x1c   : > { %p449_p10 = pnand %p448_p8, %p444_p4 }
  0x1e   : > { %452 = shalt.err (!%p449_p10)
}
  0x1f   : > { %s536_s26 = smov 256   ;;  %s537_s28 = smov 128  }
  0x20   : > { %s538_s29 = smov 8   ;;  %p156_p1 = scmp.lt.s32.totalorder %s534_s15, 3 }
  0x21   : > { %388 = dma.hbm_to_vmem [thread:$0]  (!%p625_p13), %s147_s5, 512, %s149_s7, %s138_s9, %s536_s26, %s537_s28, %s538_s29  }
  0x22   : > { %p157_p2 = pnand %p373_p0, %p156_p1 }
  0x23   : > { %s644_s30 = sand.u32 (!%p157_p2), 1, %s526_s13  }
  0x24   : > { %160 = sbr.rel (%p157_p2) target bundleno = 237 (0xed), region = 32  ;;  %s374_s4 = sshll.u32 (!%p157_p2), %s644_s30, 5 }
  0x25   : > { %s163_s6 = scalar_lea.sflag (!%p157_p2), [#allocation3], %s644_s30  ;;  %s166_s10 = scalar_lea.vmem (!%p157_p2), [#allocation2], %s374_s4 }
  0x29   : > { %513 = dma.done.wait (%p603_p6), %s163_s6, 512  }
  0x2a   : > { %515 = vsyncadd (%p603_p6), %s163_s6, 4294966784  ;;  %v539_v0 = vmov 0   ;;  %v193_v1 = vld [vmem:[%s166_s10 + $0x18] sm:$0xff]  ;;  %v192_v2 = vld [vmem:[%s166_s10 + $0x10] sm:$0xff]  ;;  %vm196_vm0 = vcmask 261120   ;;  %s375_s9 = sshll.u32 %s644_s30, 3 }
  0x2b   : > { %431 = vset.pattern.permute.xlu0 %v539_v0  ;;  %v191_v3 = vld [vmem:[%s166_s10 + $0x8] sm:$0xff]  ;;  %212 = vmatpush.msra.mxu0 %v193_v1  ;;  %v190_v5 = vld [vmem:[%s166_s10] sm:$0xff]  ;;  %v222_v7 = vmul.f32 %v192_v2, %v192_v2  ;;  %v223_v9 = vmul.f32 %v193_v1, %v193_v1  ;;  %s378_s11 = sshll.u32 %s581_s16, 3  ;;  %s189_s22 = scalar_lea.vmem [#allocation5], %s375_s9 }
  0x2c   : > { %v221_v4 = vmul.f32 %v191_v3, %v191_v3  ;;  %v195_v6 = vld [vmem:[%s694_s2] sm:$0xff]  ;;  %v220_v8 = vmul.f32 %v190_v5, %v190_v5  ;;  %s293_s20 = scalar_lea.hbm %s695_s3, %s378_s11  ;;  %s295_s27 = sshll.u32 %s189_s22, 4  ;;  %s296_s27 = int_to_ptr.vmem [resolvable:$true] %s295_s27 }
  0x2d   : > { %247 = vperm.xlu0 %431, %v195_v6   ;;  %213 = vmatpush.msra.mxu0 %v192_v2  ;;  %v194_v11 = vld [vmem:[%s693_s1] sm:$0xff]  ;;  %s297_s26 = sshll.u32 %s293_s20, 4  ;;  %s283_s16 = scalar_lea.sflag [#allocation4], %s644_s30  ;;  %s298_s26 = int_to_ptr.hbm [resolvable:$true] %s297_s26 }
  0x2e   : > { %v224_v10 = vadd.f32 %v221_v4, %v220_v8  ;;  %s482_s28 = sshra.s32 %s298_s26, 4  ;;  %s488_s10 = scalar_lea.hbm %s695_s3, 16  ;;  %s483_s28 = int_to_ptr.hbm [resolvable:$true] %s482_s28 }
  0x2f   : > { %214 = vmatpush.msra.mxu0 %v191_v3  ;;  %s484_s29 = scalar_lea.hbm %s483_s28, 8  ;;  %p489_p3 = scmp.lt.s32.totalorder %s483_s28, %s695_s3 }
  0x30   : > { %v225_v12 = vadd.f32 %v224_v10, %v222_v7  ;;  %p485_p6 = scmp.ne.s32.totalorder %s483_s28, %s484_s29  ;;  %p490_p4 = scmp.lt.s32.totalorder %s488_s10, %s484_s29 }
  0x31   : > { %215 = vmatpush.msra.mxu0 %v190_v5 }
  0x32   : > { %v226_v13 = vadd.f32 %v225_v12, %v223_v9  ;;  %376 = vmatmul.msk.f32.vlgmr.msra.gmra.mxu0 %vm196_vm0, %v194_v11  ;;  %p486_p13 = pnand %p485_p6, %p610_p11  ;;  %p491_p5 = por %p490_p4, %p489_p3 }
  0x34   : > { %v227_v14 = vrot.slane %v226_v13, 4  ;;  %p487_p0 = pneg %p486_p13 }
  0x36   : > { %v228_v15 = vadd.f32 %v227_v14, %v226_v13  ;;  %p492_p7 = pnand %p491_p5, %p487_p0 }
  0x38   : > { %v229_v16 = vrot.slane %v228_v15, 2 }
  0x3a   : > { %v230_v17 = vadd.f32 %v229_v16, %v228_v15 }
  0x3c   : > { %v231_v18 = vrot.slane %v230_v17, 1 }
  0x3e   : > { %v232_v19 = vadd.f32 %v231_v18, %v230_v17 }
  0x40   : > { %v233_v20 = vadd.f32 0.00032, %v232_v19 }
  0x42   : > { %432 = vrsqrt.f32 %v233_v20  ;;  %vm240_vm1 = vweird.f32 %v233_v20 }
  0x48   : > { %v433_v21 = vpop.eup %432 }
  0x49   : > { %v235_v22 = vmul.f32 %v433_v21, %v233_v20  ;;  %vm241_vm2 = vweird.f32 %v433_v21 }
  0x4a   : > { %vm242_vm3 = vmor %vm240_vm1, %vm241_vm2 }
  0x4b   : > { %v236_v23 = vmul.f32 %v433_v21, %v235_v22 }
  0x4d   : > { %v237_v24 = vmul.f32 0.5, %v236_v23 }
  0x4f   : > { %v238_v25 = vsub.f32 1.5, %v237_v24 }
  0x51   : > { %v239_v26 = vmul.f32 %v433_v21, %v238_v25 }
  0x53   : > { %v243_v27 = vsel %vm242_vm3, %v433_v21, %v239_v26 }
  0x9f   : > { %v248_v29 = vpop.permute.xlu0 %247 }
  0xaf   : > { %v217_v28 = vpop.f32.mrf.mxu0 }
  0xb0   : > { %v244_v30 = vmul.f32 %v243_v27, %v217_v28 }
  0xb2   : > { %v250_v31 = vadd.f32 %v248_v29, %v244_v30 }
  0xb4   : > { %v251_v32 = vrot.slane %v250_v31, 4 }
  0xb6   : > { %v252_v33 = vmax.f32 %v250_v31, %v251_v32 }
  0xb8   : > { %v253_v34 = vrot.slane %v252_v33, 2 }
  0xba   : > { %v254_v35 = vmax.f32 %v252_v33, %v253_v34 }
  0xbc   : > { %v255_v36 = vrot.slane %v254_v35, 1 }
  0xbe   : > { %v256_v37 = vmax.f32 %v254_v35, %v255_v36 }
  0xc0   : > { %v257_v38 = vsub.f32 %v250_v31, %v256_v37 }
  0xc2   : > { %v258_v39 = vmul.f32 1.442695, %v257_v38 }
  0xc4   : > { %434 = vpow2.f32 %v258_v39 }
  0xca   : > { %v435_v40 = vpop.eup %434 }
  0xcb   : > { %v260_v41 = vrot.slane %v435_v40, 4 }
  0xcd   : > { %v261_v42 = vadd.f32 %v435_v40, %v260_v41 }
  0xcf   : > { %v262_v43 = vrot.slane %v261_v42, 2 }
  0xd1   : > { %v263_v44 = vadd.f32 %v262_v43, %v261_v42 }
  0xd3   : > { %v264_v45 = vrot.slane %v263_v44, 1 }
  0xd5   : > { %v265_v46 = vadd.f32 %v264_v45, %v263_v44 }
  0xd7   : > { %436 = vrcp.f32 %v265_v46  ;;  %v277_v50 = vand.u32 2147483648, %v265_v46  ;;  %v275_v52 = vand.u32 2147483647, %v265_v46  ;;  %vm271_vm5 = vweird.f32 %v265_v46 }
  0xd9   : > { %v278_v54 = vor.u32 1.1754944e-38, %v277_v50  ;;  %vm276_vm7 = vcmp.eq.f32.partialorder %v275_v52, 8.507059e+37 }
  0xdd   : > { %v437_v47 = vpop.eup %436 }
  0xde   : > { %v267_v48 = vmul.f32 %v437_v47, %v265_v46  ;;  %vm272_vm4 = vweird.f32 %v437_v47 }
  0xdf   : > { %vm273_vm6 = vmor %vm271_vm5, %vm272_vm4 }
  0xe0   : > { %v268_v49 = vsub.f32 1.0, %v267_v48 }
  0xe2   : > { %v269_v51 = vmul.f32 %v437_v47, %v268_v49 }
  0xe4   : > { %v270_v53 = vadd.f32 %v437_v47, %v269_v51 }
  0xe6   : > { %v274_v55 = vsel %vm273_vm6, %v437_v47, %v270_v53 }
  0xe7   : > { %v279_v56 = vsel %vm276_vm7, %v278_v54, %v274_v55 }
  0xe8   : > { %v280_v57 = vmul.f32 %v435_v40, %v279_v56 }
  0xea   : > { %281 = vst [vmem:[%s189_s22] sm:$0xff] %v280_v57 }
  0xeb   : > { %495 = shalt.err (!%p492_p7)
}
  0xec   : > { %383 = dma.vmem_to_hbm [thread:$0]  (%p610_p11), %s296_s27, 128, %s298_s26, %s283_s16  }
  0xed PF: > { %s309_s30 = sand.u32 1, %s522_s12   ;;  %p390_p8 = pnand %p370_p9, %p614_p12 }
  0xee   : > { %s310_s23 = scalar_lea.sflag [#allocation4], %s309_s30 }
  0xef   : > { %p391_p10 = pneg %p390_p8 }
  0xf1   : > { %517 = dma.done.wait (%p391_p10), %s310_s23, 128  }
  0xf2   : > { %519 = vsyncadd (%p391_p10), %s310_s23, 4294967168  ;;  %p16_p1 = scmp.ge.s32.totalorder %s585_s18, 4   ;;  %s701_s12 = smov %s526_s13 }
  0xf3   : > { %s702_s13 = smov %s530_s14  ;;  %s703_s14 = smov %s597_s21 }
  0xf4   : > { %s704_s15 = smov %s585_s18  ;;  %18 = sbr.rel (!%p16_p1) target bundleno = 5 (0x5), region = 77 }
  0xf9   :  { %316 = vsyncpa [#allocation3], 1 }
  0xfa   :  { %318 = vsyncpa [#allocation3 + $0x1], 1 }
  0xfb   :  { %319 = vsyncpa [#allocation4], 1 }
  0xfc   :  { %321 = vsyncpa [#allocation4 + $0x1], 1 }

</bundles_post_ra>
